<compile_context>
chip_gen: v5e
topology: v5e:2x2
jax: 0.10.0
libtpu: 0.0.40
codegen_flags: <defaults>
</compile_context>

<pallas_src>
import numpy as np
import jax
import jax.numpy as jnp
from jax.experimental import pallas as pl
from jax.experimental.pallas import tpu as pltpu

# Model hyper-parameters (small, consistent with the module's forward).
D_MODEL = 32
N_HEADS = 4
D_HEAD = D_MODEL // N_HEADS
DIM_FF = 64
BATCH = 2
SEQ = 8

_NEG = -9.0e15   # same constant torch's scaled_dot_product uses
_EPS = 1e-5


# ------------------------------ slab layout (shared host/kernel) ------------------------------
def _slab_layout(batch, seq):
    """Row layout of the single packed bf16 parameter slab (rows, 128).
    Every block height is a multiple of 16 -> every block start is bf16-tile aligned."""
    D, H, F = D_MODEL, N_HEADS, DIM_FF
    N = batch * seq
    HN = H * N
    blocks = [
        ("wqkv", D, 3 * D), ("woc", D, D), ("woa", D, D),
        ("wff1", D, F), ("wff2", F, D),
        ("kbd_m", D, HN),        # block-diag K selector * 1/sqrt(d_head)
        ("seg", HN, D),          # head-block selector (0/1)
        ("mask_c", N, HN),       # additive causal & same-batch mask (0 / -9e15)
        ("mask_x", N, HN),       # additive same-batch mask         (0 / -9e15)
        # biases / LN vectors pre-broadcast to N rows (no in-kernel broadcasts)
        ("bqkv", N, 3 * D), ("boc", N, D), ("boa", N, D),
        ("bff1", N, F), ("bff2", N, D),
        ("ln1w", N, D), ("ln1b", N, D),
        ("ln2w", N, D), ("ln2b", N, D),
        ("ln3w", N, D), ("ln3b", N, D),
    ]
    layout, r = {}, 0
    for name, nr, nc in blocks:
        layout[name] = (r, nr, nc)
        r += nr
    return layout, r


_LAYOUT, _SLAB_ROWS = _slab_layout(BATCH, SEQ)


# ------------------------------ Pallas kernel ------------------------------
def decoder_block_kernel(xin_ref, slab_ref, out_ref):
    D, H, F = D_MODEL, N_HEADS, DIM_FF
    N = xin_ref.shape[1]
    bf16, f32 = jnp.bfloat16, jnp.float32

    def blk(name):                                   # static slice -> zero-cost bf16 view
        r, nr, nc = _LAYOUT[name]
        return slab_ref[r:r + nr, 0:nc]

    def blk_f32(name):
        return blk(name).astype(f32)

    x0 = xin_ref[0]                                  # (N, D) f32
    skip = xin_ref[1]                                # (N, D) f32

    # bf16 weight matrices feed the MXU directly (f32 accumulate).
    wqkv, woc, woa = blk("wqkv"), blk("woc"), blk("woa")
    wff1, wff2 = blk("wff1"), blk("wff2")
    seg_bf = blk("seg")                              # 0/1 -> exact in bf16 (den matmul RHS)
    # Structural constants / masks / biases used in VPU math -> f32.
    kbd_m = blk_f32("kbd_m")
    seg_f = seg_bf.astype(f32)
    mask_c, mask_x = blk_f32("mask_c"), blk_f32("mask_x")
    bqkv, boc, boa = blk_f32("bqkv"), blk_f32("boc"), blk_f32("boa")
    bff1, bff2 = blk_f32("bff1"), blk_f32("bff2")
    ln1w, ln1b = blk_f32("ln1w"), blk_f32("ln1b")
    ln2w, ln2b = blk_f32("ln2w"), blk_f32("ln2b")
    ln3w, ln3b = blk_f32("ln3w"), blk_f32("ln3b")

    def layernorm(x, w, b):
        # Two *independent* cross-lane reductions (sum, sum of squares); var = E[x^2]-mu^2.
        s1 = jnp.sum(x, axis=-1, keepdims=True)
        s2 = jnp.sum(x * x, axis=-1, keepdims=True)
        mu = s1 * (1.0 / D)
        var = s2 * (1.0 / D) - mu * mu
        return (x - mu) * jax.lax.rsqrt(var + _EPS) * w + b

    def mha(q, k, v, mask_add):
        # All heads and both batch rows in one pair of 2-D bf16 MXU contractions:
        #   kbd[i, h*N+t] = k[t, i] * (i//dh == h) * 1/sqrt(dh)   -> dots (N, H*N)
        #   vbd[h*N+t, c] = v[t, c] * (c//dh == h)                -> ctx  (N, D)
        kbd = jnp.tile(k.T, (1, H)) * kbd_m                               # (D, H*N) f32
        dots = jnp.dot(q.astype(bf16), kbd.astype(bf16),
                       preferred_element_type=f32)                        # (N, H*N) f32
        dots = dots + mask_add                                            # additive mask
        # Per-row global max (>= every per-head max): mathematically identical softmax;
        # scores are O(1) here so no per-head underflow is possible.
        m = jnp.max(dots, axis=-1, keepdims=True)
        p = jnp.exp(dots - m)                                             # masked cols -> 0
        pb = p.astype(bf16)
        vbd = jnp.tile(v, (H, 1)) * seg_f                                 # (H*N, D) f32
        num = jnp.dot(pb, vbd.astype(bf16), preferred_element_type=f32)   # (N, D) unnormalized
        den = jnp.dot(pb, seg_bf, preferred_element_type=f32)             # (N, D) per-head denom
        return num / den                                                  # exact normalization

    # ---- causal multi-head self-attention ----
    qkv = jnp.dot(x0.astype(bf16), wqkv, preferred_element_type=f32) + bqkv     # (N, 3D)
    attn_c = mha(qkv[:, 0:D], qkv[:, D:2 * D], qkv[:, 2 * D:3 * D], mask_c)
    x1 = jnp.dot(attn_c.astype(bf16), woc, preferred_element_type=f32) + boc
    x2 = layernorm(x0 + x1, ln1w, ln1b)

    # ---- non-causal multi-head attention against the skip connection ----
    attn_x = mha(x2, skip, skip, mask_x)
    x4 = jnp.dot(attn_x.astype(bf16), woa, preferred_element_type=f32) + boa
    x5 = layernorm(x2 + x4, ln2w, ln2b)

    # ---- feedforward MLP ----
    h1 = jnp.maximum(jnp.dot(x5.astype(bf16), wff1, preferred_element_type=f32) + bff1, 0.0)
    x6 = jnp.dot(h1.astype(bf16), wff2, preferred_element_type=f32) + bff2
    out_ref[...] = layernorm(x6 + x5, ln3w, ln3b)


# ------------------------------ host-side packing ------------------------------
def pack_params(params):
    """One-time host-side repack of the 16 raw parameter arrays + attention structural
    constants into a single lane-dense bf16 slab (one DMA)."""
    (wqkv, bqkv, woc, boc, woa, boa, w1, b1, w2, b2,
     ln1w, ln1b, ln2w, ln2b, ln3w, ln3b) = [np.asarray(p, np.float32) for p in params]
    D, H, dh, F = D_MODEL, N_HEADS, D_HEAD, DIM_FF
    N, HN = BATCH * SEQ, N_HEADS * BATCH * SEQ
    assert 3 * D <= 128 and HN <= 128 and F <= 128, "packed slab assumes <=128 lanes per block"
    scale = 1.0 / float(dh) ** 0.5

    # W_qkv / b_qkv: per-head [q|k|v] interleave -> [Q_all | K_all | V_all] head-major,
    # so q/k/v are contiguous 32-lane slices of the projection output.
    wq = wqkv.reshape(D, H, 3, dh).transpose(0, 2, 1, 3).reshape(D, 3 * D)
    bq = bqkv.reshape(H, 3, dh).transpose(1, 0, 2).reshape(3 * D)

    # Structural constants: block-diagonal head selectors (1/sqrt(dh) folded into the K one)
    # and the additive (causal & same-batch) / (same-batch) score masks.
    feat = np.arange(D)
    col = np.arange(HN)                       # flattened (head, key) column index
    row = np.arange(N)                        # flattened (batch, query) row index
    kbd_m = (feat[:, None] // dh == col[None, :] // N).astype(np.float32) * scale   # (D, H*N)
    seg = (col[:, None] // N == feat[None, :] // dh).astype(np.float32)             # (H*N, D)
    same_batch = (row[:, None] // SEQ) == ((col[None, :] % N) // SEQ)
    causal = (col[None, :] % N) <= row[:, None]
    mask_c = np.where(same_batch & causal, 0.0, _NEG).astype(np.float32)             # additive
    mask_x = np.where(same_batch, 0.0, _NEG).astype(np.float32)

    def bcast(v):
        v = np.asarray(v, np.float32).reshape(1, -1)
        return np.broadcast_to(v, (N, v.shape[1])).copy()

    blocks = {
        "wqkv": wq, "woc": woc, "woa": woa, "wff1": w1, "wff2": w2,
        "kbd_m": kbd_m, "seg": seg, "mask_c": mask_c, "mask_x": mask_x,
        "bqkv": bcast(bq), "boc": bcast(boc), "boa": bcast(boa),
        "bff1": bcast(b1), "bff2": bcast(b2),
        "ln1w": bcast(ln1w), "ln1b": bcast(ln1b),
        "ln2w": bcast(ln2w), "ln2b": bcast(ln2b),
        "ln3w": bcast(ln3w), "ln3b": bcast(ln3b),
    }
    slab = np.zeros((_SLAB_ROWS, 128), np.float32)
    for name, (r, nr, nc) in _LAYOUT.items():
        arr = blocks[name]
        assert arr.shape == (nr, nc), (name, arr.shape, (nr, nc))
        slab[r:r + nr, :nc] = arr
    return jnp.asarray(slab, dtype=jnp.bfloat16)      # bf16: halves the slab DMA + VMEM


def decoder_block(x0, skip, slab):
    B, S, D = x0.shape
    N = B * S
    # Single stacked activation input -> 2 input DMAs total (activations + parameter slab);
    # no grid (single invocation, whole arrays resident in VMEM).
    xin = jnp.stack([x0.reshape(N, D), skip.reshape(N, D)], axis=0)
    out = pl.pallas_call(
        decoder_block_kernel,
        out_shape=jax.ShapeDtypeStruct((N, D), jnp.float32),
        in_specs=[pl.BlockSpec(memory_space=pltpu.MemorySpace.VMEM),
                  pl.BlockSpec(memory_space=pltpu.MemorySpace.VMEM)],
        out_specs=pl.BlockSpec(memory_space=pltpu.MemorySpace.VMEM),
    )(xin, slab)
    return out.reshape(B, S, D)


# ------------------------- pure-JAX reference -------------------------
def decoder_block_ref(x0, skip, params):
    (wqkv, bqkv, woc, boc, woa, boa, w1, b1, w2, b2,
     ln1w, ln1b, ln2w, ln2b, ln3w, ln3b) = params
    B, S, D = x0.shape
    scale = 1.0 / (float(D_HEAD) ** 0.5)

    def softmax_lse(d):
        m = jnp.max(d, axis=-1, keepdims=True)
        lse = m + jnp.log(jnp.sum(jnp.exp(d - m), axis=-1, keepdims=True))
        return jnp.exp(d - lse)

    qkv = x0 @ wqkv + bqkv                                   # (B,S,3D)
    qkv = qkv.reshape(B, S, N_HEADS, 3 * D_HEAD).transpose(0, 2, 1, 3)
    q, k, v = jnp.split(qkv, 3, axis=-1)
    dots = jnp.einsum("bhsd,bhtd->bhst", q, k) * scale
    mask = jnp.tril(jnp.ones((S, S), bool))
    dots = jnp.where(mask, dots, _NEG)
    x1 = jnp.einsum("bhst,bhtd->bhsd", softmax_lse(dots), v)
    x1 = x1.transpose(0, 2, 1, 3).reshape(B, S, D) @ woc + boc

    def ln(x, w, b):
        mu = jnp.mean(x, -1, keepdims=True)
        var = jnp.mean((x - mu) ** 2, -1, keepdims=True)
        return (x - mu) / jnp.sqrt(var + _EPS) * w[0] + b[0]

    x2 = ln(x0 + x1, ln1w, ln1b)
    x3 = x2.reshape(B, S, N_HEADS, D_HEAD).transpose(0, 2, 1, 3)
    sk = skip.reshape(B, S, N_HEADS, D_HEAD).transpose(0, 2, 1, 3)
    dots = jnp.einsum("bhsd,bhtd->bhst", x3, sk) * scale
    x4 = jnp.einsum("bhst,bhtd->bhsd", softmax_lse(dots), sk)
    x4 = x4.transpose(0, 2, 1, 3).reshape(B, S, D) @ woa + boa
    x5 = ln(x2 + x4, ln2w, ln2b)
    x6 = jnp.maximum(x5 @ w1 + b1, 0.0) @ w2 + b2
    return ln(x6 + x5, ln3w, ln3b)


def init_params(key):
    ks = jax.random.split(key, 10)
    D, F = D_MODEL, DIM_FF
    p = [
        jax.random.normal(ks[0], (D, 3 * D), jnp.float32) * 0.05,   # W_qkv (in,out)
        jax.random.normal(ks[1], (1, 3 * D), jnp.float32) * 0.02,   # b_qkv
        jax.random.normal(ks[2], (D, D), jnp.float32) * 0.05,       # W_o causal
        jax.random.normal(ks[3], (1, D), jnp.float32) * 0.02,       # b_o causal
        jax.random.normal(ks[4], (D, D), jnp.float32) * 0.05,       # W_o cross
        jax.random.normal(ks[5], (1, D), jnp.float32) * 0.02,       # b_o cross
        jax.random.normal(ks[6], (D, F), jnp.float32) * 0.05,       # W_ff1
        jax.random.normal(ks[7], (1, F), jnp.float32) * 0.02,       # b_ff1
        jax.random.normal(ks[8], (F, D), jnp.float32) * 0.05,       # W_ff2
        jax.random.normal(ks[9], (1, D), jnp.float32) * 0.02,       # b_ff2
        jnp.ones((1, D), jnp.float32), jnp.zeros((1, D), jnp.float32),   # LN1
        jnp.ones((1, D), jnp.float32), jnp.zeros((1, D), jnp.float32),   # LN2
        jnp.ones((1, D), jnp.float32), jnp.zeros((1, D), jnp.float32),   # LN3
    ]
    return p


if __name__ == "__main__":
    key = jax.random.PRNGKey(0)
    kx, ks, kp = jax.random.split(key, 3)
    x0 = jax.random.normal(kx, (BATCH, SEQ, D_MODEL), jnp.float32)
    skip = jax.random.normal(ks, (BATCH, SEQ, D_MODEL), jnp.float32)
    params = init_params(kp)

    slab = pack_params(params)                 # one-time host-side repack (bf16)

    out = decoder_block(x0, skip, slab)
    out = jax.block_until_ready(out)

    ref = decoder_block_ref(x0, skip, params)
    assert out.shape == (BATCH, SEQ, D_MODEL)
    # 3e-2 tolerance: the kernel feeds the MXU bf16 operands (f32 accumulation) per the
    # performance guidance; the reference runs entirely in f32 with exact logsumexp softmax.
    assert jnp.allclose(out, ref, rtol=3e-2, atol=3e-2), "mismatch vs JAX reference"
    print("KERNEL_OK")
</pallas_src>

<mosaic_0001>
module attributes {stable_mosaic.version = 11 : i64} {
  func.func @decoder_block_kernel(%arg0: memref<2x16x32xf32, #tpu.memory_space<vmem>>, %arg1: memref<496x128xbf16, #tpu.memory_space<vmem>>, %arg2: memref<16x32xf32, #tpu.memory_space<vmem>>) attributes {dimension_semantics = [], scalar_prefetch = 0 : i64, scratch_operands = 0 : i64, tpu.core_type = #tpu.core_type<tc>} {
    %c0 = arith.constant 0 : index
    %c0_0 = arith.constant 0 : index
    %c0_1 = arith.constant 0 : index
    %0 = vector.load %arg0[%c0, %c0_0, %c0_1] : memref<2x16x32xf32, #tpu.memory_space<vmem>>, vector<1x16x32xf32>
    %1 = vector.shape_cast %0 : vector<1x16x32xf32> to vector<16x32xf32>
    %c1 = arith.constant 1 : index
    %c0_2 = arith.constant 0 : index
    %c0_3 = arith.constant 0 : index
    %2 = vector.load %arg0[%c1, %c0_2, %c0_3] : memref<2x16x32xf32, #tpu.memory_space<vmem>>, vector<1x16x32xf32>
    %3 = vector.shape_cast %2 : vector<1x16x32xf32> to vector<16x32xf32>
    %c0_4 = arith.constant 0 : index
    %c0_5 = arith.constant 0 : index
    %4 = vector.load %arg1[%c0_4, %c0_5] : memref<496x128xbf16, #tpu.memory_space<vmem>>, vector<32x96xbf16>
    %c32 = arith.constant 32 : index
    %c0_6 = arith.constant 0 : index
    %5 = vector.load %arg1[%c32, %c0_6] : memref<496x128xbf16, #tpu.memory_space<vmem>>, vector<32x32xbf16>
    %c64 = arith.constant 64 : index
    %c0_7 = arith.constant 0 : index
    %6 = vector.load %arg1[%c64, %c0_7] : memref<496x128xbf16, #tpu.memory_space<vmem>>, vector<32x32xbf16>
    %c96 = arith.constant 96 : index
    %c0_8 = arith.constant 0 : index
    %7 = vector.load %arg1[%c96, %c0_8] : memref<496x128xbf16, #tpu.memory_space<vmem>>, vector<32x64xbf16>
    %c128 = arith.constant 128 : index
    %c0_9 = arith.constant 0 : index
    %8 = vector.load %arg1[%c128, %c0_9] : memref<496x128xbf16, #tpu.memory_space<vmem>>, vector<64x32xbf16>
    %c224 = arith.constant 224 : index
    %c0_10 = arith.constant 0 : index
    %9 = vector.load %arg1[%c224, %c0_10] : memref<496x128xbf16, #tpu.memory_space<vmem>>, vector<64x32xbf16>
    %c192 = arith.constant 192 : index
    %c0_11 = arith.constant 0 : index
    %10 = vector.load %arg1[%c192, %c0_11] : memref<496x128xbf16, #tpu.memory_space<vmem>>, vector<32x64xbf16>
    %11 = arith.extf %10 : vector<32x64xbf16> to vector<32x64xf32>
    %12 = arith.extf %9 : vector<64x32xbf16> to vector<64x32xf32>
    %c288 = arith.constant 288 : index
    %c0_12 = arith.constant 0 : index
    %13 = vector.load %arg1[%c288, %c0_12] : memref<496x128xbf16, #tpu.memory_space<vmem>>, vector<16x64xbf16>
    %14 = arith.extf %13 : vector<16x64xbf16> to vector<16x64xf32>
    %c304 = arith.constant 304 : index
    %c0_13 = arith.constant 0 : index
    %15 = vector.load %arg1[%c304, %c0_13] : memref<496x128xbf16, #tpu.memory_space<vmem>>, vector<16x64xbf16>
    %16 = arith.extf %15 : vector<16x64xbf16> to vector<16x64xf32>
    %c320 = arith.constant 320 : index
    %c0_14 = arith.constant 0 : index
    %17 = vector.load %arg1[%c320, %c0_14] : memref<496x128xbf16, #tpu.memory_space<vmem>>, vector<16x96xbf16>
    %18 = arith.extf %17 : vector<16x96xbf16> to vector<16x96xf32>
    %c336 = arith.constant 336 : index
    %c0_15 = arith.constant 0 : index
    %19 = vector.load %arg1[%c336, %c0_15] : memref<496x128xbf16, #tpu.memory_space<vmem>>, vector<16x32xbf16>
    %20 = arith.extf %19 : vector<16x32xbf16> to vector<16x32xf32>
    %c352 = arith.constant 352 : index
    %c0_16 = arith.constant 0 : index
    %21 = vector.load %arg1[%c352, %c0_16] : memref<496x128xbf16, #tpu.memory_space<vmem>>, vector<16x32xbf16>
    %22 = arith.extf %21 : vector<16x32xbf16> to vector<16x32xf32>
    %c368 = arith.constant 368 : index
    %c0_17 = arith.constant 0 : index
    %23 = vector.load %arg1[%c368, %c0_17] : memref<496x128xbf16, #tpu.memory_space<vmem>>, vector<16x64xbf16>
    %24 = arith.extf %23 : vector<16x64xbf16> to vector<16x64xf32>
    %c384 = arith.constant 384 : index
    %c0_18 = arith.constant 0 : index
    %25 = vector.load %arg1[%c384, %c0_18] : memref<496x128xbf16, #tpu.memory_space<vmem>>, vector<16x32xbf16>
    %26 = arith.extf %25 : vector<16x32xbf16> to vector<16x32xf32>
    %c400 = arith.constant 400 : index
    %c0_19 = arith.constant 0 : index
    %27 = vector.load %arg1[%c400, %c0_19] : memref<496x128xbf16, #tpu.memory_space<vmem>>, vector<16x32xbf16>
    %28 = arith.extf %27 : vector<16x32xbf16> to vector<16x32xf32>
    %c416 = arith.constant 416 : index
    %c0_20 = arith.constant 0 : index
    %29 = vector.load %arg1[%c416, %c0_20] : memref<496x128xbf16, #tpu.memory_space<vmem>>, vector<16x32xbf16>
    %30 = arith.extf %29 : vector<16x32xbf16> to vector<16x32xf32>
    %c432 = arith.constant 432 : index
    %c0_21 = arith.constant 0 : index
    %31 = vector.load %arg1[%c432, %c0_21] : memref<496x128xbf16, #tpu.memory_space<vmem>>, vector<16x32xbf16>
    %32 = arith.extf %31 : vector<16x32xbf16> to vector<16x32xf32>
    %c448 = arith.constant 448 : index
    %c0_22 = arith.constant 0 : index
    %33 = vector.load %arg1[%c448, %c0_22] : memref<496x128xbf16, #tpu.memory_space<vmem>>, vector<16x32xbf16>
    %34 = arith.extf %33 : vector<16x32xbf16> to vector<16x32xf32>
    %c464 = arith.constant 464 : index
    %c0_23 = arith.constant 0 : index
    %35 = vector.load %arg1[%c464, %c0_23] : memref<496x128xbf16, #tpu.memory_space<vmem>>, vector<16x32xbf16>
    %36 = arith.extf %35 : vector<16x32xbf16> to vector<16x32xf32>
    %c480 = arith.constant 480 : index
    %c0_24 = arith.constant 0 : index
    %37 = vector.load %arg1[%c480, %c0_24] : memref<496x128xbf16, #tpu.memory_space<vmem>>, vector<16x32xbf16>
    %38 = arith.extf %37 : vector<16x32xbf16> to vector<16x32xf32>
    %39 = arith.truncf %1 : vector<16x32xf32> to vector<16x32xbf16>
    %cst = arith.constant dense<0.000000e+00> : vector<16x96xf32>
    %40 = tpu.matmul %39, %4, %cst {dimension_numbers = #tpu.dot_dimension_numbers<[1], [0], [0], [1], [0, 0, 1, 1], [], []>} : vector<16x32xbf16>, vector<32x96xbf16>, vector<16x96xf32> -> vector<16x96xf32>
    %41 = arith.addf %40, %18 : vector<16x96xf32>
    %42 = vector.extract_strided_slice %41 {offsets = [0, 0], sizes = [16, 32], strides = [1, 1]} : vector<16x96xf32> to vector<16x32xf32>
    %43 = vector.extract_strided_slice %41 {offsets = [0, 32], sizes = [16, 32], strides = [1, 1]} : vector<16x96xf32> to vector<16x32xf32>
    %44 = vector.extract_strided_slice %41 {offsets = [0, 64], sizes = [16, 32], strides = [1, 1]} : vector<16x96xf32> to vector<16x32xf32>
    %45 = tpu.transpose %43, [1, 0] : vector<16x32xf32> -> vector<32x16xf32>
    %46 = tpu.concatenate %45, %45, %45, %45 in 1 : vector<32x16xf32>, vector<32x16xf32>, vector<32x16xf32>, vector<32x16xf32> -> vector<32x64xf32>
    %47 = arith.mulf %46, %11 : vector<32x64xf32>
    %48 = arith.truncf %42 : vector<16x32xf32> to vector<16x32xbf16>
    %49 = arith.truncf %47 : vector<32x64xf32> to vector<32x64xbf16>
    %cst_25 = arith.constant dense<0.000000e+00> : vector<16x64xf32>
    %50 = tpu.matmul %48, %49, %cst_25 {dimension_numbers = #tpu.dot_dimension_numbers<[1], [0], [0], [1], [0, 0, 1, 1], [], []>} : vector<16x32xbf16>, vector<32x64xbf16>, vector<16x64xf32> -> vector<16x64xf32>
    %51 = arith.addf %50, %14 : vector<16x64xf32>
    %cst_26 = arith.constant dense<0xFF800000> : vector<16xf32>
    %52 = vector.multi_reduction <maximumf>, %51, %cst_26 [1] : vector<16x64xf32> to vector<16xf32>
    %53 = vector.shape_cast %52 : vector<16xf32> to vector<16x1xf32>
    %54 = vector.broadcast %53 : vector<16x1xf32> to vector<16x64xf32>
    %55 = arith.subf %51, %54 : vector<16x64xf32>
    %56 = math.exp %55 : vector<16x64xf32>
    %57 = arith.truncf %56 : vector<16x64xf32> to vector<16x64xbf16>
    %58 = tpu.concatenate %44, %44, %44, %44 in 0 : vector<16x32xf32>, vector<16x32xf32>, vector<16x32xf32>, vector<16x32xf32> -> vector<64x32xf32>
    %59 = arith.mulf %58, %12 : vector<64x32xf32>
    %60 = arith.truncf %59 : vector<64x32xf32> to vector<64x32xbf16>
    %cst_27 = arith.constant dense<0.000000e+00> : vector<16x32xf32>
    %61 = tpu.matmul %57, %60, %cst_27 {dimension_numbers = #tpu.dot_dimension_numbers<[1], [0], [0], [1], [0, 0, 1, 1], [], []>} : vector<16x64xbf16>, vector<64x32xbf16>, vector<16x32xf32> -> vector<16x32xf32>
    %cst_28 = arith.constant dense<0.000000e+00> : vector<16x32xf32>
    %62 = tpu.matmul %57, %9, %cst_28 {dimension_numbers = #tpu.dot_dimension_numbers<[1], [0], [0], [1], [0, 0, 1, 1], [], []>} : vector<16x64xbf16>, vector<64x32xbf16>, vector<16x32xf32> -> vector<16x32xf32>
    %63 = arith.divf %61, %62 : vector<16x32xf32>
    %64 = arith.truncf %63 : vector<16x32xf32> to vector<16x32xbf16>
    %cst_29 = arith.constant dense<0.000000e+00> : vector<16x32xf32>
    %65 = tpu.matmul %64, %5, %cst_29 {dimension_numbers = #tpu.dot_dimension_numbers<[1], [0], [0], [1], [0, 0, 1, 1], [], []>} : vector<16x32xbf16>, vector<32x32xbf16>, vector<16x32xf32> -> vector<16x32xf32>
    %66 = arith.addf %65, %20 : vector<16x32xf32>
    %67 = arith.addf %1, %66 : vector<16x32xf32>
    %cst_30 = arith.constant dense<0.000000e+00> : vector<16xf32>
    %68 = vector.multi_reduction <add>, %67, %cst_30 [1] : vector<16x32xf32> to vector<16xf32>
    %69 = vector.shape_cast %68 : vector<16xf32> to vector<16x1xf32>
    %70 = arith.mulf %67, %67 : vector<16x32xf32>
    %cst_31 = arith.constant dense<0.000000e+00> : vector<16xf32>
    %71 = vector.multi_reduction <add>, %70, %cst_31 [1] : vector<16x32xf32> to vector<16xf32>
    %72 = vector.shape_cast %71 : vector<16xf32> to vector<16x1xf32>
    %cst_32 = arith.constant 3.125000e-02 : f32
    %73 = vector.broadcast %cst_32 : f32 to vector<16x1xf32>
    %74 = arith.mulf %69, %73 : vector<16x1xf32>
    %cst_33 = arith.constant 3.125000e-02 : f32
    %75 = vector.broadcast %cst_33 : f32 to vector<16x1xf32>
    %76 = arith.mulf %72, %75 : vector<16x1xf32>
    %77 = arith.mulf %74, %74 : vector<16x1xf32>
    %78 = arith.subf %76, %77 : vector<16x1xf32>
    %79 = vector.broadcast %74 : vector<16x1xf32> to vector<16x32xf32>
    %80 = arith.subf %67, %79 : vector<16x32xf32>
    %cst_34 = arith.constant 9.99999974E-6 : f32
    %81 = vector.broadcast %cst_34 : f32 to vector<16x1xf32>
    %82 = arith.addf %78, %81 : vector<16x1xf32>
    %83 = math.rsqrt %82 : vector<16x1xf32>
    %84 = vector.broadcast %83 : vector<16x1xf32> to vector<16x32xf32>
    %85 = arith.mulf %80, %84 : vector<16x32xf32>
    %86 = arith.mulf %85, %28 : vector<16x32xf32>
    %87 = arith.addf %86, %30 : vector<16x32xf32>
    %88 = tpu.transpose %3, [1, 0] : vector<16x32xf32> -> vector<32x16xf32>
    %89 = tpu.concatenate %88, %88, %88, %88 in 1 : vector<32x16xf32>, vector<32x16xf32>, vector<32x16xf32>, vector<32x16xf32> -> vector<32x64xf32>
    %90 = arith.mulf %89, %11 : vector<32x64xf32>
    %91 = arith.truncf %87 : vector<16x32xf32> to vector<16x32xbf16>
    %92 = arith.truncf %90 : vector<32x64xf32> to vector<32x64xbf16>
    %cst_35 = arith.constant dense<0.000000e+00> : vector<16x64xf32>
    %93 = tpu.matmul %91, %92, %cst_35 {dimension_numbers = #tpu.dot_dimension_numbers<[1], [0], [0], [1], [0, 0, 1, 1], [], []>} : vector<16x32xbf16>, vector<32x64xbf16>, vector<16x64xf32> -> vector<16x64xf32>
    %94 = arith.addf %93, %16 : vector<16x64xf32>
    %cst_36 = arith.constant dense<0xFF800000> : vector<16xf32>
    %95 = vector.multi_reduction <maximumf>, %94, %cst_36 [1] : vector<16x64xf32> to vector<16xf32>
    %96 = vector.shape_cast %95 : vector<16xf32> to vector<16x1xf32>
    %97 = vector.broadcast %96 : vector<16x1xf32> to vector<16x64xf32>
    %98 = arith.subf %94, %97 : vector<16x64xf32>
    %99 = math.exp %98 : vector<16x64xf32>
    %100 = arith.truncf %99 : vector<16x64xf32> to vector<16x64xbf16>
    %101 = tpu.concatenate %3, %3, %3, %3 in 0 : vector<16x32xf32>, vector<16x32xf32>, vector<16x32xf32>, vector<16x32xf32> -> vector<64x32xf32>
    %102 = arith.mulf %101, %12 : vector<64x32xf32>
    %103 = arith.truncf %102 : vector<64x32xf32> to vector<64x32xbf16>
    %cst_37 = arith.constant dense<0.000000e+00> : vector<16x32xf32>
    %104 = tpu.matmul %100, %103, %cst_37 {dimension_numbers = #tpu.dot_dimension_numbers<[1], [0], [0], [1], [0, 0, 1, 1], [], []>} : vector<16x64xbf16>, vector<64x32xbf16>, vector<16x32xf32> -> vector<16x32xf32>
    %cst_38 = arith.constant dense<0.000000e+00> : vector<16x32xf32>
    %105 = tpu.matmul %100, %9, %cst_38 {dimension_numbers = #tpu.dot_dimension_numbers<[1], [0], [0], [1], [0, 0, 1, 1], [], []>} : vector<16x64xbf16>, vector<64x32xbf16>, vector<16x32xf32> -> vector<16x32xf32>
    %106 = arith.divf %104, %105 : vector<16x32xf32>
    %107 = arith.truncf %106 : vector<16x32xf32> to vector<16x32xbf16>
    %cst_39 = arith.constant dense<0.000000e+00> : vector<16x32xf32>
    %108 = tpu.matmul %107, %6, %cst_39 {dimension_numbers = #tpu.dot_dimension_numbers<[1], [0], [0], [1], [0, 0, 1, 1], [], []>} : vector<16x32xbf16>, vector<32x32xbf16>, vector<16x32xf32> -> vector<16x32xf32>
    %109 = arith.addf %108, %22 : vector<16x32xf32>
    %110 = arith.addf %87, %109 : vector<16x32xf32>
    %cst_40 = arith.constant dense<0.000000e+00> : vector<16xf32>
    %111 = vector.multi_reduction <add>, %110, %cst_40 [1] : vector<16x32xf32> to vector<16xf32>
    %112 = vector.shape_cast %111 : vector<16xf32> to vector<16x1xf32>
    %113 = arith.mulf %110, %110 : vector<16x32xf32>
    %cst_41 = arith.constant dense<0.000000e+00> : vector<16xf32>
    %114 = vector.multi_reduction <add>, %113, %cst_41 [1] : vector<16x32xf32> to vector<16xf32>
    %115 = vector.shape_cast %114 : vector<16xf32> to vector<16x1xf32>
    %cst_42 = arith.constant 3.125000e-02 : f32
    %116 = vector.broadcast %cst_42 : f32 to vector<16x1xf32>
    %117 = arith.mulf %112, %116 : vector<16x1xf32>
    %cst_43 = arith.constant 3.125000e-02 : f32
    %118 = vector.broadcast %cst_43 : f32 to vector<16x1xf32>
    %119 = arith.mulf %115, %118 : vector<16x1xf32>
    %120 = arith.mulf %117, %117 : vector<16x1xf32>
    %121 = arith.subf %119, %120 : vector<16x1xf32>
    %122 = vector.broadcast %117 : vector<16x1xf32> to vector<16x32xf32>
    %123 = arith.subf %110, %122 : vector<16x32xf32>
    %cst_44 = arith.constant 9.99999974E-6 : f32
    %124 = vector.broadcast %cst_44 : f32 to vector<16x1xf32>
    %125 = arith.addf %121, %124 : vector<16x1xf32>
    %126 = math.rsqrt %125 : vector<16x1xf32>
    %127 = vector.broadcast %126 : vector<16x1xf32> to vector<16x32xf32>
    %128 = arith.mulf %123, %127 : vector<16x32xf32>
    %129 = arith.mulf %128, %32 : vector<16x32xf32>
    %130 = arith.addf %129, %34 : vector<16x32xf32>
    %131 = arith.truncf %130 : vector<16x32xf32> to vector<16x32xbf16>
    %cst_45 = arith.constant dense<0.000000e+00> : vector<16x64xf32>
    %132 = tpu.matmul %131, %7, %cst_45 {dimension_numbers = #tpu.dot_dimension_numbers<[1], [0], [0], [1], [0, 0, 1, 1], [], []>} : vector<16x32xbf16>, vector<32x64xbf16>, vector<16x64xf32> -> vector<16x64xf32>
    %133 = arith.addf %132, %24 : vector<16x64xf32>
    %cst_46 = arith.constant 0.000000e+00 : f32
    %134 = vector.broadcast %cst_46 : f32 to vector<16x64xf32>
    %135 = arith.maximumf %133, %134 : vector<16x64xf32>
    %136 = arith.truncf %135 : vector<16x64xf32> to vector<16x64xbf16>
    %cst_47 = arith.constant dense<0.000000e+00> : vector<16x32xf32>
    %137 = tpu.matmul %136, %8, %cst_47 {dimension_numbers = #tpu.dot_dimension_numbers<[1], [0], [0], [1], [0, 0, 1, 1], [], []>} : vector<16x64xbf16>, vector<64x32xbf16>, vector<16x32xf32> -> vector<16x32xf32>
    %138 = arith.addf %137, %26 : vector<16x32xf32>
    %139 = arith.addf %138, %130 : vector<16x32xf32>
    %cst_48 = arith.constant dense<0.000000e+00> : vector<16xf32>
    %140 = vector.multi_reduction <add>, %139, %cst_48 [1] : vector<16x32xf32> to vector<16xf32>
    %141 = vector.shape_cast %140 : vector<16xf32> to vector<16x1xf32>
    %142 = arith.mulf %139, %139 : vector<16x32xf32>
    %cst_49 = arith.constant dense<0.000000e+00> : vector<16xf32>
    %143 = vector.multi_reduction <add>, %142, %cst_49 [1] : vector<16x32xf32> to vector<16xf32>
    %144 = vector.shape_cast %143 : vector<16xf32> to vector<16x1xf32>
    %cst_50 = arith.constant 3.125000e-02 : f32
    %145 = vector.broadcast %cst_50 : f32 to vector<16x1xf32>
    %146 = arith.mulf %141, %145 : vector<16x1xf32>
    %cst_51 = arith.constant 3.125000e-02 : f32
    %147 = vector.broadcast %cst_51 : f32 to vector<16x1xf32>
    %148 = arith.mulf %144, %147 : vector<16x1xf32>
    %149 = arith.mulf %146, %146 : vector<16x1xf32>
    %150 = arith.subf %148, %149 : vector<16x1xf32>
    %151 = vector.broadcast %146 : vector<16x1xf32> to vector<16x32xf32>
    %152 = arith.subf %139, %151 : vector<16x32xf32>
    %cst_52 = arith.constant 9.99999974E-6 : f32
    %153 = vector.broadcast %cst_52 : f32 to vector<16x1xf32>
    %154 = arith.addf %150, %153 : vector<16x1xf32>
    %155 = math.rsqrt %154 : vector<16x1xf32>
    %156 = vector.broadcast %155 : vector<16x1xf32> to vector<16x32xf32>
    %157 = arith.mulf %152, %156 : vector<16x32xf32>
    %158 = arith.mulf %157, %36 : vector<16x32xf32>
    %159 = arith.addf %158, %38 : vector<16x32xf32>
    %c0_53 = arith.constant 0 : index
    %c0_54 = arith.constant 0 : index
    %160 = vector.load %arg2[%c0_53, %c0_54] : memref<16x32xf32, #tpu.memory_space<vmem>>, vector<16x32xf32>
    tpu.vector_store %arg2[%c0_53, %c0_54], %159 {strides = array<i32>} : memref<16x32xf32, #tpu.memory_space<vmem>>, vector<16x32xf32>,
    return
  }
}

</mosaic_0001>

<bundles_post_ra>
// kernel: tpu_custom_call.1
= control target key start
LH: loop header
LB: loop body
LE: loop exit
PB: predicated region body
PF: predicated region fallthrough
CT: control target
= control target key end

     0   :  { %7 = vsyncpa [#allocation3], 0  ;;  %s1556_s0 = inlined_call_operand.hbm [shape: f32[2,16,32], index: 0, kind: input, shape index: {}]   ;;  %s1557_s1 = inlined_call_operand.hbm [shape: bf16[496,128], index: 1, kind: input, shape index: {}]   ;;  %s1558_s2 = inlined_call_operand.hbm [shape: f32[16,32], index: 2, kind: output, shape index: {}]  }
   0x1   :  { %8 = vsyncpa [#allocation6], 0 }
   0x2   :  { %9 = vsyncpa [#allocation4], 0  ;;  %s14_s11 = sshll.u32 %s1556_s0, 4  ;;  %s1274_s12 = smov [#allocation2]   ;;  %s15_s11 = int_to_ptr.hbm [resolvable:$true] %s14_s11 }
   0x3   :  { %s16_s13 = sshll.u32 %s1274_s12, 4  ;;  %s27_s16 = sshll.u32 %s1557_s1, 4  ;;  %s17_s13 = int_to_ptr.vmem [resolvable:$true] %s16_s13  ;;  %s28_s16 = int_to_ptr.hbm [resolvable:$true] %s27_s16 }
   0x4   :  { %s1275_s17 = smov 128   ;;  %s1276_s18 = smov 8  }
   0x5   :  { %22 = dma.hbm_to_vmem [thread:$0]  %s15_s11, 512, %s17_s13, [#allocation3], %s1275_s17, %s1275_s17, %s1276_s18  }
   0x6   :  { %s1277_s19 = smov [#allocation5]   ;;  %s1278_s21 = smov 64  }
   0x7   :  { %s29_s20 = sshll.u32 %s1277_s19, 4  ;;  %s1279_s0 = smov 4   ;;  %s30_s20 = int_to_ptr.vmem [resolvable:$true] %s29_s20 }
   0x8   :  { %35 = dma.hbm_to_vmem [thread:$0]  %s28_s16, 3968, %s30_s20, [#allocation6], %s1278_s21, %s1278_s21, %s1279_s0  }
   0x9   :  { %1268 = dma.done.wait [#allocation3], 512  }
   0xa   :  { %1269 = vsyncadd [#allocation3], 4294966784 }
   0xb   :  { %1270 = dma.done.wait [#allocation6], 3968  }
   0xc   :  { %1271 = vsyncadd [#allocation6], 4294963328  ;;  %v1046_v0 = vld [vmem:[#allocation5 + $0x8] sm:$0xff]  ;;  %v1045_v1 = vld [vmem:[#allocation5] sm:$0xff]  ;;  %vm163_vm0 = vcmask 261120   ;;  %s1280_s1 = smov 96  }
   0xd   :  { %173 = vmatpush.bf16.msra.mxu0 %v1046_v0  ;;  %v1311_v2 = vld [vmem:[#allocation2] sm:$0xff]  ;;  %v1313_v3 = vld [vmem:[#allocation2 + $0x8] sm:$0xff]  ;;  %s1281_s22 = smov 32   ;;  %s1282_s23 = smov 16   ;;  %v1352_v22 = vld [vmem:[#allocation5 + $0x70] sm:$0xff]   ;;  %vm261_vm1 = vcmask 130048  }
   0xe   :  { %v150_v4 = vpack.c.bf16 %v1313_v3, %v1311_v2  ;;  %v1125_v5 = vld [vmem:[#allocation5 + $0xa0] sm:$0xff]   ;;  %s1283_s24 = smov 48   ;;  %v1354_v23 = vld [vmem:[#allocation5 + $0x88] sm:$0xff]   ;;  %v90_v24 = vunpack.c.l.bf16 %v1352_v22  ;;  %v91_v25 = vunpack.c.h.bf16 %v1352_v22  ;;  %v1371_v30 = vld [vmem:[#allocation5 + $0x78] sm:$0xff]   ;;  %vm270_vm2 = vcmask 392192   ;;  %s1284_s25 = smov [#allocation7]  }
   0xf   :  { %v1079_v6 = vunpack.c.l.bf16 %v1125_v5  ;;  %v1080_v9 = vunpack.c.h.bf16 %v1125_v5  ;;  %v1340_v18 = vld [vmem:[#allocation5 + $0x80] sm:$0xff]   ;;  %v96_v26 = vunpack.c.l.bf16 %v1354_v23  ;;  %v97_v27 = vunpack.c.h.bf16 %v1354_v23  ;;  %v1383_v44 = vld [vmem:[#allocation5 + $0x68] sm:$0xff]   ;;  %s954_s26 = sshll.u32 %s1284_s25, 4  ;;  %s956_s29 = sshll.u32 %s1558_s2, 4  ;;  %s955_s26 = int_to_ptr.vmem [resolvable:$true] %s954_s26  ;;  %s957_s29 = int_to_ptr.hbm [resolvable:$true] %s956_s29 }
  0x10   :  { %v94_v19 = vunpack.c.l.bf16 %v1340_v18  ;;  %v95_v20 = vunpack.c.h.bf16 %v1340_v18  ;;  %v1163_v28 = vpack.i.bf16 %v91_v25, %v90_v24  ;;  %v92_v31 = vunpack.c.l.bf16 %v1371_v30  ;;  %v1396_v59 = vld [vmem:[#allocation5 + $0x60] sm:$0xff]   ;;  %v1050_v22 = vld [vmem:[#allocation5 + $0x28] sm:$0xff] }
  0x11   :  { %174 = vmatpush.bf16.msra.mxu0 %v1045_v1  ;;  %v1148_v29 = vpack.i.bf16 %v97_v27, %v96_v26  ;;  %v93_v32 = vunpack.c.h.bf16 %v1371_v30  ;;  %v1067_v47 = vunpack.c.l.bf16 %v1383_v44  ;;  %v1068_v48 = vunpack.c.h.bf16 %v1383_v44 }
  0x12   :  { %v1153_v21 = vpack.i.bf16 %v95_v20, %v94_v19  ;;  %v1063_v1 = vunpack.c.l.bf16 %v1396_v59  ;;  %v1064_v5 = vunpack.c.h.bf16 %v1396_v59  ;;  %vm299_vm3 = vcmask 523264   ;;  %v1131_v59 = vld [vmem:[#allocation5 + $0xd0] sm:$0xff]  }
  0x13   :  { %v1158_v33 = vpack.i.bf16 %v93_v32, %v92_v31 }
  0x14   :  { %978 = vmatmul.msk.bf16.vlgmr.msra.gmra.mxu0 %vm163_vm0, %v150_v4 }
  0x91   :  { %v176_v7 = vpop.f32.mrf.mxu0 }
  0x92   :  { %v1318_v8 = vadd.f32 %v1079_v6, %v176_v7 }
  0x94   :  { %183 = vrot.lane.b32.xlu0 %v1318_v8, %s1280_s1 }
  0x99   :  { %v178_v10 = vpop.f32.mrf.mxu0 }
  0x9a   :  { %v1321_v11 = vadd.f32 %v1080_v9, %v178_v10 }
  0x9c   :  { %185 = vrot.lane.b32.xlu0 %v1321_v11, %s1280_s1 }
 0x106   :  { %v184_v12 = vpop.permute.xlu0 %183 }
 0x107   :  { %189 = vxpose.xlu1.b32.start [1/2] (short) (narrow) %v184_v12, 32 }
 0x10e   :  { %v186_v13 = vpop.permute.xlu0 %185 }
 0x10f   :  { %190 = vxpose.xlu1.b32.end [2/2] (short) (narrow) %v186_v13, 32 }
 0x1ab   :  { %v1324_v14 = vpop.trf.xlu1 }
 0x1b3   :  { %v1326_v15 = vpop.trf.xlu1 }
 0x1bb   :  { %v207_v16 = vpop.trf.xlu1 }
 0x1bc   :  { %241 = vrot.lane.b32.xlu0 %v207_v16, %s1281_s22  ;;  %229 = vrot.lane.b32.xlu2 %v207_v16, %s1282_s23 }
 0x1c3   :  { %v208_v17 = vpop.trf.xlu1 }
 0x1c4   :  { %227 = vrot.lane.b32.xlu0 %v1326_v15, %s1282_s23  ;;  %243 = vrot.lane.b32.xlu1 %v208_v17, %s1281_s22 }
 0x1c5   :  { %231 = vrot.lane.b32.xlu2 %v208_v17, %s1282_s23 }
 0x1cc   :  { %239 = vrot.lane.b32.xlu0 %v1326_v15, %s1281_s22 }
 0x1cd   :  { %253 = vrot.lane.b32.xlu2 %v207_v16, %s1283_s24 }
 0x1d4   :  { %255 = vrot.lane.b32.xlu0 %v208_v17, %s1283_s24 }
 0x1d5   :  { %225 = vrot.lane.b32.xlu2 %v1324_v14, %s1282_s23 }
 0x1dc   :  { %251 = vrot.lane.b32.xlu0 %v1326_v15, %s1283_s24 }
 0x1dd   :  { %237 = vrot.lane.b32.xlu2 %v1324_v14, %s1281_s22 }
 0x1e4   :  { %1154 = vrot.lane.b32.xlu0 %v1153_v21, %s1278_s21 }
 0x1e5   :  { %249 = vrot.lane.b32.xlu2 %v1324_v14, %s1283_s24 }
 0x1ec   :  { %1164 = vrot.lane.b32.xlu0 %v1163_v28, %s1278_s21 }
 0x1ed   :  { %1149 = vrot.lane.b32.xlu2 %v1148_v29, %s1278_s21 }
 0x1f5   :  { %1159 = vrot.lane.b32.xlu2 %v1158_v33, %s1278_s21 }
 0x216   :  { %v230_v34 = vpop.permute.xlu2 %229 }
 0x217   :  { %v264_v43 = vsel %vm261_vm1, %v207_v16, %v230_v34  ;;  %v279_v34 = vpack.c.bf16 %v1321_v11, %v1318_v8 }
 0x21f   :  { %v232_v35 = vpop.permute.xlu2 %231 }
 0x220   :  { %v265_v49 = vsel %vm261_vm1, %v208_v17, %v232_v35 }
 0x227   :  { %v254_v36 = vpop.permute.xlu2 %253 }
 0x22e   :  { %v242_v37 = vpop.permute.xlu0 %241 }
 0x22f   :  { %v226_v38 = vpop.permute.xlu2 %225  ;;  %v268_v45 = vsel %vm163_vm0, %v264_v43, %v242_v37  ;;  %v1421_v37 = vld [vmem:[#allocation2 + $0x10] sm:$0xff] }
 0x230   :  { %v273_v50 = vsel %vm270_vm2, %v268_v45, %v254_v36  ;;  %v262_v63 = vsel %vm261_vm1, %v1324_v14, %v226_v38  ;;  %v1123_v36 = vld [vmem:[#allocation5 + $0x90] sm:$0xff]  }
 0x231   :  { %v277_v57 = vmul.f32 %v1067_v47, %v273_v50  ;;  %v1071_v38 = vunpack.c.l.bf16 %v1123_v36  ;;  %v1072_v45 = vunpack.c.h.bf16 %v1123_v36  ;;  %v1047_v36 = vld [vmem:[#allocation5 + $0x10] sm:$0xff] }
 0x236   :  { %v228_v39 = vpop.permute.xlu0 %227  ;;  %v244_v46 = vpop.permute.xlu1 %243 }
 0x237   :  { %v238_v40 = vpop.permute.xlu2 %237  ;;  %v269_v51 = vsel %vm163_vm0, %v265_v49, %v244_v46  ;;  %v263_v6 = vsel %vm261_vm1, %v1326_v15, %v228_v39 }
 0x238   :  { %v266_v0 = vsel %vm163_vm0, %v262_v63, %v238_v40  ;;  %v1060_v63 = vld [vmem:[#allocation5 + $0x88] sm:$0xff] }
 0x239   :  { %418 = vmatpush.bf16.msra.mxu3 %v1060_v63 }
 0x23e   :  { %v240_v41 = vpop.permute.xlu0 %239 }
 0x23f   :  { %v250_v42 = vpop.permute.xlu2 %249  ;;  %v267_v9 = vsel %vm163_vm0, %v263_v6, %v240_v41  ;;  %v1424_v41 = vld [vmem:[#allocation2 + $0x18] sm:$0xff]  ;;  %v1057_v6 = vld [vmem:[#allocation5 + $0x70] sm:$0xff] }
 0x240   :  { %v271_v7 = vsel %vm270_vm2, %v266_v0, %v250_v42  ;;  %v1059_v0 = vld [vmem:[#allocation5 + $0x80] sm:$0xff]  ;;  %v666_v23 = vmul.f32 %v93_v32, %v1424_v41 }
 0x241   :  { %v275_v14 = vmul.f32 %v1063_v1, %v271_v7  ;;  %419 = vmatpush.bf16.msra.mxu3 %v1059_v0 }
 0x246   :  { %v256_v52 = vpop.permute.xlu0 %255 }
 0x247   :  { %v274_v53 = vsel %vm270_vm2, %v269_v51, %v256_v52  ;;  %v1150_v54 = vpop.permute.xlu2 %1149 }
 0x248   :  { %v1152_v55 = vunpack.i.h.bf16 %v1150_v54  ;;  %v1151_v56 = vunpack.i.l.bf16 %v1150_v54  ;;  %v278_v58 = vmul.f32 %v1068_v48, %v274_v53 }
 0x24a   :  { %v281_v60 = vpack.c.bf16 %v278_v58, %v277_v57  ;;  %v351_v61 = vmul.f32 %v1151_v56, %v1318_v8  ;;  %v352_v62 = vmul.f32 %v1152_v55, %v1321_v11 }
 0x24c   :  { %291 = vmatpush.bf16.msra.mxu1 %v281_v60  ;;  %v356_v4 = vpack.c.bf16 %v352_v62, %v351_v61 }
 0x24e   :  { %367 = vrot.lane.b32.xlu2 %v356_v4, %s1278_s21  ;;  %v252_v10 = vpop.permute.xlu0 %251  ;;  %v1058_v4 = vld [vmem:[#allocation5 + $0x78] sm:$0xff] }
 0x24f   :  { %v272_v12 = vsel %vm270_vm2, %v267_v9, %v252_v10  ;;  %v1160_v13 = vpop.permute.xlu2 %1159  ;;  %420 = vmatpush.bf16.msra.mxu3 %v1058_v4 }
 0x250   :  { %v276_v16 = vmul.f32 %v1064_v5, %v272_v12  ;;  %v1162_v17 = vunpack.i.h.bf16 %v1160_v13  ;;  %v1161_v21 = vunpack.i.l.bf16 %v1160_v13 }
 0x252   :  { %v280_v28 = vpack.c.bf16 %v276_v16, %v275_v14  ;;  %v347_v15 = vmul.f32 %v1161_v21, %v1318_v8  ;;  %v348_v29 = vmul.f32 %v1162_v17, %v1321_v11 }
 0x253   :  { %421 = vmatpush.bf16.msra.mxu3 %v1057_v6 }
 0x254   :  { %292 = vmatpush.bf16.msra.mxu1 %v280_v28  ;;  %v354_v33 = vpack.c.bf16 %v348_v29, %v347_v15 }
 0x256   :  { %363 = vrot.lane.b32.xlu1 %v354_v33, %s1278_s21  ;;  %v1155_v43 = vpop.permute.xlu0 %1154 }
 0x257   :  { %979 = vmatmul.msk.bf16.vlgmr.msra.gmra.mxu1 %vm163_vm0, %v279_v34  ;;  %v1157_v54 = vunpack.i.h.bf16 %v1155_v43  ;;  %v1156_v55 = vunpack.i.l.bf16 %v1155_v43  ;;  %696 = vmatpush.bf16.msrb.mxu3 %v1060_v63 }
 0x259   :  { %v349_v60 = vmul.f32 %v1156_v55, %v1318_v8  ;;  %v350_v61 = vmul.f32 %v1157_v54, %v1321_v11 }
 0x25b   :  { %v355_v62 = vpack.c.bf16 %v350_v61, %v349_v60  ;;  %697 = vmatpush.bf16.msrb.mxu3 %v1059_v0 }
 0x25e   :  { %v1165_v51 = vpop.permute.xlu0 %1164 }
 0x25f   :  { %v1167_v52 = vunpack.i.h.bf16 %v1165_v51  ;;  %v1166_v53 = vunpack.i.l.bf16 %v1165_v51  ;;  %698 = vmatpush.bf16.msrb.mxu3 %v1058_v4 }
 0x261   :  { %v345_v56 = vmul.f32 %v1166_v53, %v1318_v8  ;;  %v346_v57 = vmul.f32 %v1167_v52, %v1321_v11 }
 0x263   :  { %v353_v58 = vpack.c.bf16 %v346_v57, %v345_v56  ;;  %699 = vmatpush.bf16.msrb.mxu3 %v1057_v6 }
 0x28b   :  { %542 = vxpose.xlu1.b32.start [1/2] (short) (narrow) %v1421_v37, 32 }
 0x293   :  { %543 = vxpose.xlu1.b32.end [2/2] (short) (narrow) %v1424_v41, 32 }
 0x2a8   :  { %v368_v35 = vpop.permute.xlu2 %367 }
 0x2a9   :  { %380 = vmatpush.bf16.msra.mxu2 %v368_v35  ;;  %v1048_v35 = vld [vmem:[#allocation5 + $0x18] sm:$0xff] }
 0x2aa   :  { %480 = vmatpush.bf16.msrb.mxu0 %v1048_v35 }
 0x2ae   :  { %481 = vmatpush.bf16.msrb.mxu0 %v1047_v36 }
 0x2b2   :  { %758 = vmatpush.bf16.msra.mxu0 %v1050_v22 }
 0x2c8   :  { %v364_v21 = vpop.permute.xlu1 %363 }
 0x2d4   :  { %v294_v39 = vpop.f32.mrf.mxu1 }
 0x2d5   :  { %v295_v40 = vadd.f32 %v1071_v38, %v294_v39 }
 0x2d7   :  { %v300_v42 = vsel %vm299_vm3, %v295_v40, -inf }
 0x2d8   :  { %301 = vmax.xlane.f32.xlu2 %v300_v42 }
 0x2dc   :  { %v296_v46 = vpop.f32.mrf.mxu1 }
 0x2dd   :  { %v297_v49 = vadd.f32 %v1072_v45, %v296_v46 }
 0x2df   :  { %v303_v50 = vsel %vm299_vm3, %v297_v49, -inf }
 0x2e0   :  { %304 = vmax.xlane.f32.xlu0 %v303_v50 }
 0x2f0   :  { %361 = vrot.lane.b32.xlu2 %v353_v58, %s1278_s21 }
 0x2f4   :  { %365 = vrot.lane.b32.xlu0 %v355_v62, %s1278_s21 }
 0x32f   :  { %v1437_v15 = vpop.trf.xlu1 }
 0x337   :  { %v1439_v29 = vpop.trf.xlu1 }
 0x33f   :  { %v560_v33 = vpop.trf.xlu1 }
 0x340   :  { %582 = vrot.lane.b32.xlu0 %v560_v33, %s1282_s23  ;;  %594 = vrot.lane.b32.xlu1 %v560_v33, %s1281_s22 }
 0x347   :  { %v561_v34 = vpop.trf.xlu1 }
 0x348   :  { %596 = vrot.lane.b32.xlu0 %v561_v34, %s1281_s22  ;;  %584 = vrot.lane.b32.xlu2 %v561_v34, %s1282_s23 }
 0x34b   :  { %v302_v7 = vpop.xlane.xlu2 %301 }
 0x34c   :  { %v306_v8 = vsub.f32 %v295_v40, %v302_v7 }
 0x34e   :  { %v308_v11 = vmul.f32 1.442695, %v306_v8 }
 0x350   :  { %1168 = vpow2.f32 %v308_v11  ;;  %608 = vrot.lane.b32.xlu0 %v561_v34, %s1283_s24  ;;  %606 = vrot.lane.b32.xlu2 %v560_v33, %s1283_s24 }
 0x353   :  { %v305_v9 = vpop.xlane.xlu0 %304  ;;  %v362_v28 = vpop.permute.xlu2 %361 }
 0x354   :  { %v307_v10 = vsub.f32 %v297_v49, %v305_v9 }
 0x356   :  { %v310_v12 = vmul.f32 1.442695, %v307_v10  ;;  %v1169_v13 = vpop.eup %1168 }
 0x358   :  { %1170 = vpow2.f32 %v310_v12  ;;  %580 = vrot.lane.b32.xlu0 %v1439_v29, %s1282_s23  ;;  %578 = vrot.lane.b32.xlu2 %v1437_v15, %s1282_s23 }
 0x35e   :  { %v1171_v14 = vpop.eup %1170 }
 0x35f   :  { %v312_v16 = vpack.c.bf16 %v1171_v14, %v1169_v13 }
 0x360   :  { %592 = vrot.lane.b32.xlu0 %v1439_v29, %s1281_s22  ;;  %590 = vrot.lane.b32.xlu2 %v1437_v15, %s1281_s22 }
 0x361   :  { %997 = vmatmul.msk.bf16.vlgmr.msra.gmra.mxu3 %vm299_vm3, %v312_v16 }
 0x366   :  { %v366_v17 = vpop.permute.xlu0 %365 }
 0x367   :  { %381 = vmatpush.bf16.msra.mxu2 %v366_v17 }
 0x36b   :  { %382 = vmatpush.bf16.msra.mxu2 %v364_v21 }
 0x36f   :  { %383 = vmatpush.bf16.msra.mxu2 %v362_v28 }
 0x372   :  { %980 = vmatmul.msk.bf16.vlgmr.msra.gmra.mxu2 %vm299_vm3, %v312_v16 }
 0x3a2   :  { %v585_v63 = vpop.permute.xlu2 %584 }
 0x3a3   :  { %v617_v17 = vsel %vm261_vm1, %v561_v34, %v585_v63 }
 0x3aa   :  { %v607_v21 = vpop.permute.xlu2 %606 }
 0x3b2   :  { %v583_v60 = vpop.permute.xlu0 %582  ;;  %v595_v12 = vpop.permute.xlu1 %594 }
 0x3b3   :  { %v616_v10 = vsel %vm261_vm1, %v560_v33, %v583_v60 }
 0x3b4   :  { %v620_v16 = vsel %vm163_vm0, %v616_v10, %v595_v12 }
 0x3b5   :  { %v624_v28 = vsel %vm270_vm2, %v620_v16, %v607_v21 }
 0x3ba   :  { %v597_v14 = vpop.permute.xlu0 %596 }
 0x3bb   :  { %v621_v35 = vsel %vm163_vm0, %v617_v17, %v597_v14 }
 0x3c2   :  { %v609_v36 = vpop.permute.xlu0 %608 }
 0x3c3   :  { %v625_v33 = vsel %vm270_vm2, %v621_v35, %v609_v36 }
 0x3e4   :  { %v423_v38 = vpop.f32.mrf.mxu3 }
 0x3e5   :  { %1172 = vrcp.f32 %v423_v38  ;;  %v439_v52 = vand.u32 2147483648, %v423_v38  ;;  %vm433_vm5 = vweird.f32 %v423_v38  ;;  %v437_v54 = vand.u32 2147483647, %v423_v38 }
 0x3e7   :  { %v440_v61 = vor.u32 1.1754944e-38, %v439_v52  ;;  %vm438_vm8 = vcmp.eq.f32.partialorder %v437_v54, 8.507059e+37 }
 0x3eb   :  { %v1173_v39 = vpop.eup %1172 }
 0x3ec   :  { %v429_v40 = vmul.f32 %v1173_v39, %v423_v38  ;;  %v425_v42 = vpop.f32.mrf.mxu3  ;;  %vm434_vm4 = vweird.f32 %v1173_v39  ;;  %v628_v38 = vmul.f32 %v1067_v47, %v624_v28 }
 0x3ed   :  { %1174 = vrcp.f32 %v425_v42  ;;  %vm435_vm6 = vmor %vm433_vm5, %vm434_vm4  ;;  %v454_v55 = vand.u32 2147483648, %v425_v42  ;;  %v452_v58 = vand.u32 2147483647, %v425_v42  ;;  %vm448_vm9 = vweird.f32 %v425_v42 }
 0x3ee   :  { %v430_v43 = vsub.f32 1.0, %v429_v40 }
 0x3ef   :  { %v455_v4 = vor.u32 1.1754944e-38, %v454_v55  ;;  %vm453_vm11 = vcmp.eq.f32.partialorder %v452_v58, 8.507059e+37  ;;  %v579_v55 = vpop.permute.xlu2 %578 }
 0x3f0   :  { %v431_v45 = vmul.f32 %v1173_v39, %v430_v43  ;;  %v614_v14 = vsel %vm261_vm1, %v1437_v15, %v579_v55 }
 0x3f2   :  { %v432_v50 = vadd.f32 %v1173_v39, %v431_v45 }
 0x3f3   :  { %v1175_v46 = vpop.eup %1174 }
 0x3f4   :  { %v444_v49 = vmul.f32 %v1175_v46, %v425_v42  ;;  %v436_v56 = vsel %vm435_vm6, %v1173_v39, %v432_v50  ;;  %vm449_vm7 = vweird.f32 %v1175_v46  ;;  %v629_v39 = vmul.f32 %v1068_v48, %v625_v33  ;;  %v1126_v42 = vld [vmem:[#allocation5 + $0xa8] sm:$0xff]  }
 0x3f5   :  { %v385_v51 = vpop.f32.mrf.mxu2  ;;  %v441_v0 = vsel %vm438_vm8, %v440_v61, %v436_v56  ;;  %vm450_vm10 = vmor %vm448_vm9, %vm449_vm7  ;;  %v1083_v43 = vunpack.c.l.bf16 %v1126_v42  ;;  %v1084_v50 = vunpack.c.h.bf16 %v1126_v42 }
 0x3f6   :  { %v445_v53 = vsub.f32 1.0, %v444_v49  ;;  %v442_v11 = vmul.f32 %v441_v0, %v385_v51  ;;  %v632_v40 = vpack.c.bf16 %v629_v39, %v628_v38 }
 0x3f8   :  { %v446_v57 = vmul.f32 %v1175_v46, %v445_v53  ;;  %642 = vmatpush.bf16.msrb.mxu1 %v632_v40 }
 0x3fa   :  { %v447_v62 = vadd.f32 %v1175_v46, %v446_v57  ;;  %v591_v57 = vpop.permute.xlu2 %590 }
 0x3fb   :  { %v618_v35 = vsel %vm163_vm0, %v614_v14, %v591_v57  ;;  %v1103_v57 = vunpack.c.l.bf16 %v1131_v59 }
 0x3fc   :  { %v451_v6 = vsel %vm450_vm10, %v1175_v46, %v447_v62 }
 0x3fd   :  { %v387_v7 = vpop.f32.mrf.mxu2  ;;  %v456_v8 = vsel %vm453_vm11, %v455_v4, %v451_v6 }
 0x3fe   :  { %v457_v9 = vmul.f32 %v456_v8, %v387_v7 }
 0x400   :  { %v458_v13 = vpack.c.bf16 %v457_v9, %v442_v11 }
 0x402   :  { %1006 = vmatmul.msk.bf16.vlgmr.msrb.gmra.mxu0 %vm163_vm0, %v458_v13 }
 0x47f   :  { %v483_v45 = vpop.f32.mrf.mxu0 }
 0x480   :  { %v484_v34 = vadd.f32 %v1083_v43, %v483_v45 }
 0x482   :  { %v1467_v46 = vadd.f32 %v484_v34, %v1311_v2 }
 0x484   :  { %v490_v49 = vsel %vm163_vm0, %v1467_v46, 0.0  ;;  %v496_v44 = vmul.f32 %v1467_v46, %v1467_v46 }
 0x485   :  { %491 = vadd.xlane.f32.xlu0 %v490_v49 }
 0x486   :  { %v498_v53 = vsel %vm163_vm0, %v496_v44, 0.0  ;;  %v1130_v44 = vld [vmem:[#allocation5 + $0xc8] sm:$0xff]  }
 0x487   :  { %v485_v47 = vpop.f32.mrf.mxu0 }
 0x488   :  { %v486_v51 = vadd.f32 %v1084_v50, %v485_v47 }
 0x48a   :  { %v1474_v48 = vadd.f32 %v486_v51, %v1313_v3  ;;  %v581_v3 = vpop.permute.xlu0 %580 }
 0x48b   :  { %v615_v17 = vsel %vm261_vm1, %v1439_v29, %v581_v3  ;;  %v1100_v3 = vunpack.c.h.bf16 %v1130_v44 }
 0x48c   :  { %v493_v52 = vsel %vm163_vm0, %v1474_v48, 0.0  ;;  %v497_v2 = vmul.f32 %v1474_v48, %v1474_v48 }
 0x48d   :  { %494 = vadd.xlane.f32.xlu2 %v493_v52  ;;  %499 = vadd.xlane.f32.xlu0 %v498_v53 }
 0x48e   :  { %v501_v54 = vsel %vm163_vm0, %v497_v2, 0.0 }
 0x492   :  { %v593_v56 = vpop.permute.xlu0 %592 }
 0x493   :  { %v619_v33 = vsel %vm163_vm0, %v615_v17, %v593_v56  ;;  %v668_v17 = vmul.f32 %v95_v20, %v1424_v41 }
 0x495   :  { %502 = vadd.xlane.f32.xlu2 %v501_v54 }
 0x4a1   :  { %604 = vrot.lane.b32.xlu0 %v1439_v29, %s1283_s24 }
 0x4ad   :  { %602 = vrot.lane.b32.xlu2 %v1437_v15, %s1283_s24 }
 0x4f8   :  { %v492_v58 = vpop.xlane.xlu0 %491 }
 0x4f9   :  { %v504_v60 = vmul.f32 0.03125, %v492_v58  ;;  %v1104_v58 = vunpack.c.h.bf16 %v1131_v59 }
 0x4fb   :  { %v508_v63 = vmul.f32 %v504_v60, %v504_v60  ;;  %v512_v52 = vsub.f32 %v1467_v46, %v504_v60 }
 0x500   :  { %v500_v61 = vpop.xlane.xlu0 %499  ;;  %v495_v62 = vpop.xlane.xlu2 %494 }
 0x501   :  { %v506_v0 = vmul.f32 0.03125, %v500_v61  ;;  %v505_v7 = vmul.f32 0.03125, %v495_v62 }
 0x503   :  { %v510_v4 = vsub.f32 %v506_v0, %v508_v63  ;;  %v509_v11 = vmul.f32 %v505_v7, %v505_v7  ;;  %v1124_v0 = vld [vmem:[#allocation5 + $0x98] sm:$0xff]  }
 0x505   :  { %v514_v6 = vadd.f32 1e-05, %v510_v4  ;;  %v1075_v4 = vunpack.c.l.bf16 %v1124_v0 }
 0x507   :  { %1176 = vrsqrt.f32 %v514_v6  ;;  %vm522_vm13 = vweird.f32 %v514_v6 }
 0x508   :  { %v503_v8 = vpop.xlane.xlu2 %502 }
 0x509   :  { %v507_v9 = vmul.f32 0.03125, %v503_v8  ;;  %v1076_v8 = vunpack.c.h.bf16 %v1124_v0 }
 0x50b   :  { %v511_v10 = vsub.f32 %v507_v9, %v509_v11 }
 0x50d   :  { %v1177_v12 = vpop.eup %1176  ;;  %v515_v13 = vadd.f32 1e-05, %v511_v10 }
 0x50e   :  { %v517_v16 = vmul.f32 %v1177_v12, %v514_v6  ;;  %vm523_vm12 = vweird.f32 %v1177_v12 }
 0x50f   :  { %1178 = vrsqrt.f32 %v515_v13  ;;  %vm524_vm14 = vmor %vm522_vm13, %vm523_vm12  ;;  %vm532_vm1 = vweird.f32 %v515_v13 }
 0x510   :  { %v518_v21 = vmul.f32 %v1177_v12, %v517_v16  ;;  %v603_v28 = vpop.permute.xlu2 %602  ;;  %v667_v16 = vmul.f32 %v94_v19, %v1421_v37  ;;  %v664_v19 = vmul.f32 %v91_v25, %v1424_v41 }
 0x511   :  { %v622_v38 = vsel %vm270_vm2, %v618_v35, %v603_v28 }
 0x512   :  { %v519_v36 = vmul.f32 0.5, %v518_v21  ;;  %v626_v15 = vmul.f32 %v1063_v1, %v622_v38  ;;  %v1099_v1 = vunpack.c.l.bf16 %v1130_v44  ;;  %v673_v21 = vpack.c.bf16 %v668_v17, %v667_v16 }
 0x513   :  { %v605_v39 = vpop.permute.xlu0 %604 }
 0x514   :  { %v520_v40 = vsub.f32 1.5, %v519_v36  ;;  %v623_v42 = vsel %vm270_vm2, %v619_v33, %v605_v39 }
 0x515   :  { %v1179_v43 = vpop.eup %1178  ;;  %v627_v29 = vmul.f32 %v1064_v5, %v623_v42  ;;  %v513_v5 = vsub.f32 %v1474_v48, %v505_v7 }
 0x516   :  { %v521_v45 = vmul.f32 %v1177_v12, %v520_v40  ;;  %v527_v34 = vmul.f32 %v1179_v43, %v515_v13  ;;  %vm533_vm15 = vweird.f32 %v1179_v43  ;;  %v670_v13 = vmul.f32 %v97_v27, %v1424_v41 }
 0x517   :  { %v631_v49 = vpack.c.bf16 %v627_v29, %v626_v15  ;;  %vm534_vm2 = vmor %vm532_vm1, %vm533_vm15  ;;  %v663_v27 = vmul.f32 %v90_v24, %v1421_v37  ;;  %v1049_v24 = vld [vmem:[#allocation5 + $0x20] sm:$0xff] }
 0x518   :  { %v528_v50 = vmul.f32 %v1179_v43, %v527_v34  ;;  %v525_v47 = vsel %vm524_vm14, %v1177_v12, %v521_v45  ;;  %v669_v12 = vmul.f32 %v96_v26, %v1421_v37  ;;  %v665_v26 = vmul.f32 %v92_v31, %v1421_v37  ;;  %759 = vmatpush.bf16.msra.mxu0 %v1049_v24 }
 0x519   :  { %643 = vmatpush.bf16.msrb.mxu1 %v631_v49  ;;  %v536_v2 = vmul.f32 %v525_v47, %v512_v52  ;;  %v671_v20 = vpack.c.bf16 %v664_v19, %v663_v27  ;;  %v1052_v27 = vld [vmem:[#allocation5 + $0x38] sm:$0xff] }
 0x51a   :  { %v529_v51 = vmul.f32 0.5, %v528_v50  ;;  %v674_v14 = vpack.c.bf16 %v670_v13, %v669_v12  ;;  %v672_v18 = vpack.c.bf16 %v666_v23, %v665_v26 }
 0x51b   :  { %v538_v61 = vmul.f32 %v1099_v1, %v536_v2 }
 0x51c   :  { %v530_v53 = vsub.f32 1.5, %v529_v51  ;;  %682 = vmatpush.bf16.msrb.mxu2 %v674_v14 }
 0x51d   :  { %v1500_v63 = vadd.f32 %v1103_v57, %v538_v61  ;;  %v1127_v61 = vld [vmem:[#allocation5 + $0xb0] sm:$0xff]   ;;  %842 = vmatpush.bf16.msra.mxu1 %v1052_v27 }
 0x51e   :  { %v531_v54 = vmul.f32 %v1179_v43, %v530_v53 }
 0x520   :  { %v535_v55 = vsel %vm534_vm2, %v1179_v43, %v531_v54  ;;  %683 = vmatpush.bf16.msrb.mxu2 %v673_v21 }
 0x521   :  { %v537_v56 = vmul.f32 %v535_v55, %v513_v5 }
 0x523   :  { %v539_v62 = vmul.f32 %v1100_v3, %v537_v56 }
 0x524   :  { %684 = vmatpush.bf16.msrb.mxu2 %v672_v18 }
 0x525   :  { %v1502_v46 = vadd.f32 %v1104_v58, %v539_v62  ;;  %v1087_v62 = vunpack.c.l.bf16 %v1127_v61 }
 0x527   :  { %v630_v60 = vpack.c.bf16 %v1502_v46, %v1500_v63 }
 0x528   :  { %685 = vmatpush.bf16.msrb.mxu2 %v671_v20 }
 0x529   :  { %1007 = vmatmul.msk.bf16.vlgmr.msrb.gmra.mxu1 %vm163_vm0, %v630_v60 }
 0x5a6   :  { %v645_v48 = vpop.f32.mrf.mxu1 }
 0x5a7   :  { %v646_v6 = vadd.f32 %v1075_v4, %v645_v48 }
 0x5a9   :  { %v650_v7 = vsel %vm299_vm3, %v646_v6, -inf }
 0x5aa   :  { %651 = vmax.xlane.f32.xlu2 %v650_v7 }
 0x5ae   :  { %v647_v11 = vpop.f32.mrf.mxu1 }
 0x5af   :  { %v648_v9 = vadd.f32 %v1076_v8, %v647_v11 }
 0x5b1   :  { %v653_v10 = vsel %vm299_vm3, %v648_v9, -inf }
 0x5b2   :  { %654 = vmax.xlane.f32.xlu0 %v653_v10 }
 0x61d   :  { %v652_v28 = vpop.xlane.xlu2 %651 }
 0x61e   :  { %v656_v35 = vsub.f32 %v646_v6, %v652_v28  ;;  %v1088_v6 = vunpack.c.h.bf16 %v1127_v61  ;;  %v1128_v61 = vld [vmem:[#allocation5 + $0xb8] sm:$0xff]  }
 0x620   :  { %v658_v36 = vmul.f32 1.442695, %v656_v35 }
 0x622   :  { %1180 = vpow2.f32 %v658_v36 }
 0x625   :  { %v655_v31 = vpop.xlane.xlu0 %654 }
 0x626   :  { %v657_v38 = vsub.f32 %v648_v9, %v655_v31  ;;  %v1056_v31 = vld [vmem:[#allocation5 + $0x58] sm:$0xff] }
 0x627   :  { %884 = vmatpush.bf16.msra.mxu2 %v1056_v31 }
 0x628   :  { %v660_v33 = vmul.f32 1.442695, %v657_v38  ;;  %v1181_v30 = vpop.eup %1180 }
 0x62a   :  { %1182 = vpow2.f32 %v660_v33 }
 0x630   :  { %v1183_v32 = vpop.eup %1182 }
 0x631   :  { %v662_v39 = vpack.c.bf16 %v1183_v32, %v1181_v30 }
 0x633   :  { %1008 = vmatmul.msk.bf16.vlgmr.msrb.gmra.mxu2 %vm299_vm3, %v662_v39  ;;  %1009 = vmatmul.msk.bf16.vlgmr.msrb.gmra.mxu3 %vm299_vm3, %v662_v39 }
 0x6b6   :  { %v701_v25 = vpop.f32.mrf.mxu3  ;;  %v687_v29 = vpop.f32.mrf.mxu2 }
 0x6b7   :  { %1184 = vrcp.f32 %v701_v25  ;;  %v717_v49 = vand.u32 2147483648, %v701_v25  ;;  %vm711_vm5 = vweird.f32 %v701_v25  ;;  %v715_v50 = vand.u32 2147483647, %v701_v25 }
 0x6b9   :  { %v718_v2 = vor.u32 1.1754944e-38, %v717_v49  ;;  %vm716_vm8 = vcmp.eq.f32.partialorder %v715_v50, 8.507059e+37 }
 0x6bd   :  { %v1185_v37 = vpop.eup %1184 }
 0x6be   :  { %v707_v41 = vmul.f32 %v1185_v37, %v701_v25  ;;  %v703_v40 = vpop.f32.mrf.mxu3  ;;  %vm712_vm4 = vweird.f32 %v1185_v37  ;;  %v689_v3 = vpop.f32.mrf.mxu2 }
 0x6bf   :  { %1186 = vrcp.f32 %v703_v40  ;;  %vm713_vm6 = vmor %vm711_vm5, %vm712_vm4  ;;  %v732_v51 = vand.u32 2147483648, %v703_v40  ;;  %v730_v53 = vand.u32 2147483647, %v703_v40  ;;  %vm726_vm9 = vweird.f32 %v703_v40 }
 0x6c0   :  { %v708_v42 = vsub.f32 1.0, %v707_v41 }
 0x6c1   :  { %v733_v59 = vor.u32 1.1754944e-38, %v732_v51  ;;  %vm731_vm11 = vcmp.eq.f32.partialorder %v730_v53, 8.507059e+37 }
 0x6c2   :  { %v709_v43 = vmul.f32 %v1185_v37, %v708_v42  ;;  %v1132_v42 = vld [vmem:[#allocation5 + $0xd8] sm:$0xff]  }
 0x6c4   :  { %v710_v45 = vadd.f32 %v1185_v37, %v709_v43 }
 0x6c5   :  { %v1187_v15 = vpop.eup %1186 }
 0x6c6   :  { %v722_v34 = vmul.f32 %v1187_v15, %v703_v40  ;;  %v714_v44 = vsel %vm713_vm6, %v1185_v37, %v710_v45  ;;  %vm727_vm7 = vweird.f32 %v1187_v15 }
 0x6c7   :  { %v719_v54 = vsel %vm716_vm8, %v718_v2, %v714_v44  ;;  %vm728_vm10 = vmor %vm726_vm9, %vm727_vm7  ;;  %v1108_v44 = vunpack.c.h.bf16 %v1132_v42 }
 0x6c8   :  { %v723_v47 = vsub.f32 1.0, %v722_v34  ;;  %v720_v56 = vmul.f32 %v719_v54, %v687_v29  ;;  %v1107_v34 = vunpack.c.l.bf16 %v1132_v42 }
 0x6ca   :  { %v724_v52 = vmul.f32 %v1187_v15, %v723_v47  ;;  %v1133_v47 = vld [vmem:[#allocation5 + $0xe0] sm:$0xff]  }
 0x6cb   :  { %v1112_v54 = vunpack.c.h.bf16 %v1133_v47 }
 0x6cc   :  { %v725_v1 = vadd.f32 %v1187_v15, %v724_v52 }
 0x6ce   :  { %v729_v5 = vsel %vm728_vm10, %v1187_v15, %v725_v1  ;;  %v1111_v1 = vunpack.c.l.bf16 %v1133_v47 }
 0x6cf   :  { %v734_v55 = vsel %vm731_vm11, %v733_v59, %v729_v5 }
 0x6d0   :  { %v735_v57 = vmul.f32 %v734_v55, %v689_v3 }
 0x6d2   :  { %v736_v58 = vpack.c.bf16 %v735_v57, %v720_v56  ;;  %v1055_v56 = vld [vmem:[#allocation5 + $0x50] sm:$0xff]  ;;  %v1054_v57 = vld [vmem:[#allocation5 + $0x48] sm:$0xff] }
 0x6d3   :  { %885 = vmatpush.bf16.msra.mxu2 %v1055_v56 }
 0x6d4   :  { %1018 = vmatmul.msk.bf16.vlgmr.msra.gmra.mxu0 %vm163_vm0, %v736_v58  ;;  %v1053_v58 = vld [vmem:[#allocation5 + $0x40] sm:$0xff] }
 0x6d7   :  { %886 = vmatpush.bf16.msra.mxu2 %v1054_v57 }
 0x6db   :  { %887 = vmatpush.bf16.msra.mxu2 %v1053_v58 }
 0x751   :  { %v761_v60 = vpop.f32.mrf.mxu0 }
 0x752   :  { %v762_v0 = vadd.f32 %v1087_v62, %v761_v60  ;;  %v1091_v60 = vunpack.c.l.bf16 %v1128_v61 }
 0x754   :  { %v766_v4 = vadd.f32 %v762_v0, %v1500_v63  ;;  %v1092_v0 = vunpack.c.h.bf16 %v1128_v61 }
 0x756   :  { %v768_v48 = vsel %vm163_vm0, %v766_v4, 0.0  ;;  %v774_v11 = vmul.f32 %v766_v4, %v766_v4 }
 0x757   :  { %769 = vadd.xlane.f32.xlu2 %v768_v48 }
 0x758   :  { %v776_v12 = vsel %vm163_vm0, %v774_v11, 0.0 }
 0x759   :  { %v763_v7 = vpop.f32.mrf.mxu0 }
 0x75a   :  { %v764_v8 = vadd.f32 %v1088_v6, %v763_v7 }
 0x75c   :  { %v767_v9 = vadd.f32 %v764_v8, %v1502_v46  ;;  %v1051_v46 = vld [vmem:[#allocation5 + $0x30] sm:$0xff] }
 0x75d   :  { %843 = vmatpush.bf16.msra.mxu1 %v1051_v46 }
 0x75e   :  { %v771_v10 = vsel %vm163_vm0, %v767_v9, 0.0  ;;  %v775_v13 = vmul.f32 %v767_v9, %v767_v9 }
 0x75f   :  { %772 = vadd.xlane.f32.xlu0 %v771_v10  ;;  %777 = vadd.xlane.f32.xlu2 %v776_v12 }
 0x760   :  { %v779_v14 = vsel %vm163_vm0, %v775_v13, 0.0 }
 0x767   :  { %780 = vadd.xlane.f32.xlu0 %v779_v14 }
 0x7ca   :  { %v770_v63 = vpop.xlane.xlu2 %769 }
 0x7cb   :  { %v782_v16 = vmul.f32 0.03125, %v770_v63 }
 0x7cd   :  { %v786_v26 = vmul.f32 %v782_v16, %v782_v16  ;;  %v790_v29 = vsub.f32 %v766_v4, %v782_v16 }
 0x7d2   :  { %v773_v17 = vpop.xlane.xlu0 %772  ;;  %v778_v21 = vpop.xlane.xlu2 %777 }
 0x7d3   :  { %v784_v23 = vmul.f32 0.03125, %v778_v21  ;;  %v783_v18 = vmul.f32 0.03125, %v773_v17 }
 0x7d5   :  { %v788_v19 = vsub.f32 %v784_v23, %v786_v26  ;;  %v787_v35 = vmul.f32 %v783_v18, %v783_v18  ;;  %v791_v51 = vsub.f32 %v767_v9, %v783_v18  ;;  %v1129_v9 = vld [vmem:[#allocation5 + $0xc0] sm:$0xff]  }
 0x7d6   :  { %v1095_v10 = vunpack.c.l.bf16 %v1129_v9  ;;  %v1096_v16 = vunpack.c.h.bf16 %v1129_v9 }
 0x7d7   :  { %v792_v20 = vadd.f32 1e-05, %v788_v19 }
 0x7d9   :  { %1188 = vrsqrt.f32 %v792_v20  ;;  %vm800_vm13 = vweird.f32 %v792_v20 }
 0x7da   :  { %v781_v28 = vpop.xlane.xlu0 %780 }
 0x7db   :  { %v785_v36 = vmul.f32 0.03125, %v781_v28 }
 0x7dd   :  { %v789_v38 = vsub.f32 %v785_v36, %v787_v35 }
 0x7df   :  { %v1189_v33 = vpop.eup %1188  ;;  %v793_v30 = vadd.f32 1e-05, %v789_v38 }
 0x7e0   :  { %v795_v32 = vmul.f32 %v1189_v33, %v792_v20  ;;  %vm801_vm12 = vweird.f32 %v1189_v33 }
 0x7e1   :  { %1190 = vrsqrt.f32 %v793_v30  ;;  %vm802_vm14 = vmor %vm800_vm13, %vm801_vm12  ;;  %vm810_vm1 = vweird.f32 %v793_v30 }
 0x7e2   :  { %v796_v39 = vmul.f32 %v1189_v33, %v795_v32 }
 0x7e4   :  { %v797_v22 = vmul.f32 0.5, %v796_v39 }
 0x7e6   :  { %v798_v24 = vsub.f32 1.5, %v797_v22 }
 0x7e7   :  { %v1191_v25 = vpop.eup %1190 }
 0x7e8   :  { %v799_v37 = vmul.f32 %v1189_v33, %v798_v24  ;;  %v805_v41 = vmul.f32 %v1191_v25, %v793_v30  ;;  %vm811_vm15 = vweird.f32 %v1191_v25 }
 0x7e9   :  { %vm812_vm2 = vmor %vm810_vm1, %vm811_vm15 }
 0x7ea   :  { %v806_v40 = vmul.f32 %v1191_v25, %v805_v41  ;;  %v803_v43 = vsel %vm802_vm14, %v1189_v33, %v799_v37 }
 0x7eb   :  { %v814_v49 = vmul.f32 %v803_v43, %v790_v29  ;;  %v1134_v29 = vld [vmem:[#allocation5 + $0xe8] sm:$0xff]  }
 0x7ec   :  { %v807_v15 = vmul.f32 0.5, %v806_v40  ;;  %v1116_v56 = vunpack.c.h.bf16 %v1134_v29 }
 0x7ed   :  { %v816_v53 = vmul.f32 %v1107_v34, %v814_v49  ;;  %v1135_v34 = vld [vmem:[#allocation5 + $0xf0] sm:$0xff]  }
 0x7ee   :  { %v808_v45 = vsub.f32 1.5, %v807_v15  ;;  %v1120_v61 = vunpack.c.h.bf16 %v1135_v34 }
 0x7ef   :  { %v818_v5 = vadd.f32 %v1111_v1, %v816_v53 }
 0x7f0   :  { %v809_v50 = vmul.f32 %v1191_v25, %v808_v45 }
 0x7f2   :  { %v813_v52 = vsel %vm812_vm2, %v1191_v25, %v809_v50  ;;  %v1115_v50 = vunpack.c.l.bf16 %v1134_v29 }
 0x7f3   :  { %v815_v2 = vmul.f32 %v813_v52, %v791_v51 }
 0x7f5   :  { %v817_v59 = vmul.f32 %v1108_v44, %v815_v2  ;;  %v1119_v44 = vunpack.c.l.bf16 %v1135_v34 }
 0x7f7   :  { %v819_v3 = vadd.f32 %v1112_v54, %v817_v59 }
 0x7f9   :  { %v820_v55 = vpack.c.bf16 %v819_v3, %v818_v5 }
 0x7fb   :  { %1027 = vmatmul.msk.bf16.vlgmr.msra.gmra.mxu1 %vm163_vm0, %v820_v55 }
 0x878   :  { %v845_v62 = vpop.f32.mrf.mxu1 }
 0x879   :  { %v846_v4 = vadd.f32 %v1091_v60, %v845_v62 }
 0x87b   :  { %v850_v7 = vmax.f32 %v846_v4, 0.0 }
 0x880   :  { %v847_v48 = vpop.f32.mrf.mxu1 }
 0x881   :  { %v848_v6 = vadd.f32 %v1092_v0, %v847_v48 }
 0x883   :  { %v851_v8 = vmax.f32 %v848_v6, 0.0 }
 0x885   :  { %v852_v11 = vpack.c.bf16 %v851_v8, %v850_v7 }
 0x887   :  { %1044 = vmatmul.msk.bf16.vlgmr.msra.gmra.mxu2 %vm299_vm3, %v852_v11 }
 0x90a   :  { %v889_v12 = vpop.f32.mrf.mxu2 }
 0x90b   :  { %v890_v13 = vadd.f32 %v1095_v10, %v889_v12 }
 0x90d   :  { %v894_v14 = vadd.f32 %v890_v13, %v818_v5 }
 0x90f   :  { %v896_v63 = vsel %vm163_vm0, %v894_v14, 0.0  ;;  %v902_v17 = vmul.f32 %v894_v14, %v894_v14 }
 0x910   :  { %897 = vadd.xlane.f32.xlu1 %v896_v63 }
 0x911   :  { %v904_v21 = vsel %vm163_vm0, %v902_v17, 0.0 }
 0x912   :  { %v891_v26 = vpop.f32.mrf.mxu2  ;;  %905 = vadd.xlane.f32.xlu0 %v904_v21 }
 0x913   :  { %v892_v23 = vadd.f32 %v1096_v16, %v891_v26 }
 0x915   :  { %v895_v27 = vadd.f32 %v892_v23, %v819_v3 }
 0x917   :  { %v899_v19 = vsel %vm163_vm0, %v895_v27, 0.0  ;;  %v903_v46 = vmul.f32 %v895_v27, %v895_v27 }
 0x918   :  { %900 = vadd.xlane.f32.xlu2 %v899_v19 }
 0x919   :  { %v907_v18 = vsel %vm163_vm0, %v903_v46, 0.0 }
 0x920   :  { %908 = vadd.xlane.f32.xlu2 %v907_v18 }
 0x983   :  { %v898_v20 = vpop.xlane.xlu1 %897 }
 0x984   :  { %v910_v28 = vmul.f32 0.03125, %v898_v20 }
 0x985   :  { %v906_v35 = vpop.xlane.xlu0 %905 }
 0x986   :  { %v914_v36 = vmul.f32 %v910_v28, %v910_v28  ;;  %v912_v31 = vmul.f32 0.03125, %v906_v35  ;;  %v918_v49 = vsub.f32 %v894_v14, %v910_v28 }
 0x988   :  { %v916_v38 = vsub.f32 %v912_v31, %v914_v36 }
 0x98a   :  { %v920_v33 = vadd.f32 1e-05, %v916_v38 }
 0x98b   :  { %v901_v30 = vpop.xlane.xlu2 %900 }
 0x98c   :  { %1192 = vrsqrt.f32 %v920_v33  ;;  %v911_v32 = vmul.f32 0.03125, %v901_v30  ;;  %vm928_vm4 = vweird.f32 %v920_v33 }
 0x98e   :  { %v915_v25 = vmul.f32 %v911_v32, %v911_v32  ;;  %v919_v55 = vsub.f32 %v895_v27, %v911_v32 }
 0x992   :  { %v1193_v39 = vpop.eup %1192 }
 0x993   :  { %v923_v22 = vmul.f32 %v1193_v39, %v920_v33  ;;  %v909_v24 = vpop.xlane.xlu2 %908  ;;  %vm929_vm3 = vweird.f32 %v1193_v39 }
 0x994   :  { %v913_v37 = vmul.f32 0.03125, %v909_v24  ;;  %vm930_vm5 = vmor %vm928_vm4, %vm929_vm3 }
 0x995   :  { %v924_v41 = vmul.f32 %v1193_v39, %v923_v22 }
 0x996   :  { %v917_v40 = vsub.f32 %v913_v37, %v915_v25 }
 0x997   :  { %v925_v42 = vmul.f32 0.5, %v924_v41 }
 0x998   :  { %v921_v43 = vadd.f32 1e-05, %v917_v40 }
 0x999   :  { %v926_v15 = vsub.f32 1.5, %v925_v42 }
 0x99a   :  { %1194 = vrsqrt.f32 %v921_v43  ;;  %vm938_vm7 = vweird.f32 %v921_v43 }
 0x99b   :  { %v927_v45 = vmul.f32 %v1193_v39, %v926_v15 }
 0x99d   :  { %v931_v47 = vsel %vm930_vm5, %v1193_v39, %v927_v45 }
 0x99e   :  { %v942_v51 = vmul.f32 %v931_v47, %v918_v49 }
 0x9a0   :  { %v1195_v52 = vpop.eup %1194  ;;  %v944_v53 = vmul.f32 %v1115_v50, %v942_v51 }
 0x9a1   :  { %v933_v2 = vmul.f32 %v1195_v52, %v921_v43  ;;  %vm939_vm6 = vweird.f32 %v1195_v52 }
 0x9a2   :  { %v946_v1 = vadd.f32 %v1119_v44, %v944_v53  ;;  %vm940_vm8 = vmor %vm938_vm7, %vm939_vm6 }
 0x9a3   :  { %v934_v54 = vmul.f32 %v1195_v52, %v933_v2 }
 0x9a4   :  { %948 = vst.msk [vmem:[#allocation7] sm:$0xff] %vm163_vm0, %v946_v1 }
 0x9a5   :  { %v935_v59 = vmul.f32 0.5, %v934_v54 }
 0x9a7   :  { %v936_v5 = vsub.f32 1.5, %v935_v59 }
 0x9a9   :  { %v937_v3 = vmul.f32 %v1195_v52, %v936_v5 }
 0x9ab   :  { %v941_v57 = vsel %vm940_vm8, %v1195_v52, %v937_v3 }
 0x9ac   :  { %v943_v58 = vmul.f32 %v941_v57, %v919_v55 }
 0x9ae   :  { %v945_v62 = vmul.f32 %v1116_v56, %v943_v58 }
 0x9b0   :  { %v947_v60 = vadd.f32 %v1120_v61, %v945_v62 }
 0x9b2   :  { %949 = vst.msk [vmem:[#allocation7 + $0x8] sm:$0xff] %vm163_vm0, %v947_v60 }
 0x9b3   :  { %962 = dma.vmem_to_hbm [thread:$0]  %s955_s26, 256, %s957_s29, [#allocation4], %s1275_s17, %s1275_s17, %s1276_s18  }
 0x9b4   :  { %1272 = dma.done.wait [#allocation4], 256  }
 0x9b5   :  { %1273 = vsyncadd [#allocation4], 4294967040 }
 0x9b6   :  { %967 = vsyncpa [#allocation3], 1 }
 0x9b7   :  { %968 = vsyncpa [#allocation6], 1 }
 0x9b8   :  { %969 = vsyncpa [#allocation4], 1 }

</bundles_post_ra>
